<compile_context>
chip_gen: v5e
topology: v5e:2x2
jax: 0.10.0
libtpu: 0.0.40
codegen_flags: <defaults>
</compile_context>

<pallas_src>
import jax
import jax.numpy as jnp
import numpy as np
from jax import lax
from jax.experimental import pallas as pl
from jax.experimental.pallas import tpu as pltpu


def _avg_pool_relu_kernel(starts_ref, ends_ref, invc_ref, node_ref, out_ref, acc_ref):
    """One grid step = (graph block gi, node-row block ni).

    starts_ref, ends_ref : VMEM i32[G_TILE, 1]   per-graph row range [start, end)
    invc_ref             : VMEM f32[G_TILE, 1]   1/count (0 for empty / padded graphs)
    node_ref             : VMEM f32[N_TILE, H_pad]
    out_ref              : VMEM f32[G_TILE, H_pad]   (resident across ni)
    acc_ref              : VMEM f32[G_TILE, H_pad]   scratch accumulator
    """
    ni = pl.program_id(1)

    @pl.when(ni == 0)
    def _():
        acc_ref[...] = jnp.zeros_like(acc_ref)

    g_tile = out_ref.shape[0]
    n_tile = node_ref.shape[0]

    # Global row indices covered by this node block: (G_TILE, N_TILE).
    row_ids = ni * n_tile + lax.broadcasted_iota(jnp.int32, (g_tile, n_tile), 1)

    # Pooling-weight tile: mask * 1/cnt  (weights for padded rows / graphs are 0).
    mask = (row_ids >= starts_ref[...]) & (row_ids < ends_ref[...])
    weights = mask.astype(jnp.float32) * invc_ref[...]           # (G_TILE, N_TILE)

    # Segment mean contribution via MXU contraction over the node-row tile.
    acc_ref[...] += jnp.dot(
        weights, node_ref[...].astype(jnp.float32),
        preferred_element_type=jnp.float32,
    )

    @pl.when(ni == pl.num_programs(1) - 1)
    def _():
        out_ref[...] = jnp.maximum(acc_ref[...], 0.0).astype(out_ref.dtype)


def gnn_embedder_forward(node_feat, batch_num_nodes, *, g_tile=8, n_tile=256):
    """Pallas equivalent of GNNEmbedder.forward with gnn_pool_type='avg'.

    node_feat        : f32[N_total, H]   node features (gnn_layers treated as identity)
    batch_num_nodes  : int32[n_graphs]   nodes per graph (rows are contiguous per graph)
    returns          : f32[n_graphs, H]  ReLU(per-graph mean of node rows)
    """
    n_graphs = int(batch_num_nodes.shape[0])
    n_total, h = node_feat.shape

    # Padded extents: graphs -> multiple of g_tile, rows -> multiple of n_tile,
    # hidden -> multiple of 128 (lane-dense output).
    g_pad = ((n_graphs + g_tile - 1) // g_tile) * g_tile
    n_pad = ((n_total + n_tile - 1) // n_tile) * n_tile
    h_pad = ((h + 127) // 128) * 128

    counts = batch_num_nodes.astype(jnp.int32)
    starts = jnp.concatenate(
        [jnp.zeros((1,), jnp.int32), jnp.cumsum(counts)[:-1].astype(jnp.int32)]
    )
    ends = starts + counts
    # Guard empty graphs: scatter_mean yields 0 for empty segments.
    inv_cnt = jnp.where(
        counts > 0, 1.0 / jnp.maximum(counts, 1).astype(jnp.float32), 0.0
    )

    starts_p = jnp.zeros((g_pad, 1), jnp.int32).at[:n_graphs, 0].set(starts)
    ends_p = jnp.zeros((g_pad, 1), jnp.int32).at[:n_graphs, 0].set(ends)
    invc_p = jnp.zeros((g_pad, 1), jnp.float32).at[:n_graphs, 0].set(inv_cnt)
    node_p = jnp.zeros((n_pad, h_pad), node_feat.dtype).at[:n_total, :h].set(node_feat)

    out = pl.pallas_call(
        _avg_pool_relu_kernel,
        out_shape=jax.ShapeDtypeStruct((g_pad, h_pad), node_feat.dtype),
        grid_spec=pltpu.PrefetchScalarGridSpec(
            num_scalar_prefetch=0,
            # Graph-block axis first (parallel, disjoint output blocks),
            # node-row reduction axis last (arbitrary).
            grid=(g_pad // g_tile, n_pad // n_tile),
            in_specs=[
                pl.BlockSpec((g_tile, 1), lambda gi, ni: (gi, 0)),        # starts
                pl.BlockSpec((g_tile, 1), lambda gi, ni: (gi, 0)),        # ends
                pl.BlockSpec((g_tile, 1), lambda gi, ni: (gi, 0)),        # 1/cnt
                pl.BlockSpec((n_tile, h_pad), lambda gi, ni: (ni, 0)),    # node rows
            ],
            out_specs=pl.BlockSpec((g_tile, h_pad), lambda gi, ni: (gi, 0)),
            scratch_shapes=[pltpu.VMEM((g_tile, h_pad), jnp.float32)],
        ),
        compiler_params=pltpu.CompilerParams(
            dimension_semantics=("parallel", "arbitrary"),
            vmem_limit_bytes=32 * 1024 * 1024,
        ),
    )(starts_p, ends_p, invc_p, node_p)

    return out[:n_graphs, :h]


if __name__ == "__main__":
    key = jax.random.PRNGKey(0)

    # Small shapes: 2 graphs, 16 total nodes (5 + 11), hidden dim 32.
    n_graphs = 2
    gnn_h_dim = 32
    batch_num_nodes = jnp.array([5, 11], dtype=jnp.int32)
    n_total = int(jnp.sum(batch_num_nodes))

    node_feat = jax.random.normal(key, (n_total, gnn_h_dim), dtype=jnp.float32)

    gh = gnn_embedder_forward(node_feat, batch_num_nodes)
    gh = jax.block_until_ready(gh)

    # Pure-JAX reference: scatter_mean over segments followed by ReLU.
    seg_id = jnp.repeat(
        jnp.arange(n_graphs), batch_num_nodes, total_repeat_length=n_total
    )
    seg_sum = jax.ops.segment_sum(node_feat, seg_id, num_segments=n_graphs)
    ref = jnp.maximum(seg_sum / batch_num_nodes[:, None].astype(jnp.float32), 0.0)

    np.testing.assert_allclose(np.asarray(gh), np.asarray(ref), rtol=1e-5, atol=1e-5)
    assert gh.shape == (n_graphs, gnn_h_dim)

    print("KERNEL_OK")
</pallas_src>

<mosaic_0001>
module attributes {stable_mosaic.version = 11 : i64} {
  func.func @_avg_pool_relu_kernel(%arg0: i32, %arg1: i32, %arg2: memref<8x1xi32, #tpu.memory_space<vmem>>, %arg3: memref<8x1xi32, #tpu.memory_space<vmem>>, %arg4: memref<8x1xf32, #tpu.memory_space<vmem>>, %arg5: memref<256x128xf32, #tpu.memory_space<vmem>>, %arg6: memref<8x128xf32, #tpu.memory_space<vmem>>, %arg7: memref<8x128xf32, #tpu.memory_space<vmem>>) attributes {dimension_semantics = [#tpu.dimension_semantics<parallel>, #tpu.dimension_semantics<arbitrary>], iteration_bounds = array<i64: 1, 1>, scalar_prefetch = 0 : i64, scratch_operands = 1 : i64, tpu.core_type = #tpu.core_type<tc>, window_params = [{transform_indices = @transform_0, window_bounds = array<i64: 8, 1>}, {transform_indices = @transform_1, window_bounds = array<i64: 8, 1>}, {transform_indices = @transform_2, window_bounds = array<i64: 8, 1>}, {transform_indices = @transform_3, window_bounds = array<i64: 256, 128>}, {transform_indices = @transform_4, window_bounds = array<i64: 8, 128>}]} {
    %c0_i32 = arith.constant 0 : i32
    %0 = arith.cmpi eq, %arg1, %c0_i32 : i32
    %1 = arith.extui %0 : i1 to i32
    %c0_i32_0 = arith.constant 0 : i32
    %2 = arith.cmpi ne, %1, %c0_i32_0 : i32
    scf.if %2 {
      %cst_14 = arith.constant 0.000000e+00 : f32
      %27 = vector.broadcast %cst_14 : f32 to vector<8x128xf32>
      %c0_15 = arith.constant 0 : index
      %c0_16 = arith.constant 0 : index
      %28 = vector.load %arg7[%c0_15, %c0_16] : memref<8x128xf32, #tpu.memory_space<vmem>>, vector<8x128xf32>
      tpu.vector_store %arg7[%c0_15, %c0_16], %27 {strides = array<i32>} : memref<8x128xf32, #tpu.memory_space<vmem>>, vector<8x128xf32>,
    } else {
    }
    %c256_i32 = arith.constant 256 : i32
    %3 = arith.muli %arg1, %c256_i32 : i32
    %4 = tpu.iota {dimensions = array<i32: 1>} : vector<8x256xi32>
    %5 = vector.broadcast %3 : i32 to vector<8x256xi32>
    %6 = arith.addi %5, %4 : vector<8x256xi32>
    %c0 = arith.constant 0 : index
    %c0_1 = arith.constant 0 : index
    %7 = vector.load %arg2[%c0, %c0_1] : memref<8x1xi32, #tpu.memory_space<vmem>>, vector<8x1xi32>
    %8 = vector.broadcast %7 : vector<8x1xi32> to vector<8x256xi32>
    %9 = arith.cmpi sge, %6, %8 : vector<8x256xi32>
    %c0_2 = arith.constant 0 : index
    %c0_3 = arith.constant 0 : index
    %10 = vector.load %arg3[%c0_2, %c0_3] : memref<8x1xi32, #tpu.memory_space<vmem>>, vector<8x1xi32>
    %11 = vector.broadcast %10 : vector<8x1xi32> to vector<8x256xi32>
    %12 = arith.cmpi slt, %6, %11 : vector<8x256xi32>
    %13 = arith.andi %9, %12 : vector<8x256xi1>
    %14 = arith.extui %13 : vector<8x256xi1> to vector<8x256xi32>
    %15 = arith.sitofp %14 : vector<8x256xi32> to vector<8x256xf32>
    %c0_4 = arith.constant 0 : index
    %c0_5 = arith.constant 0 : index
    %16 = vector.load %arg4[%c0_4, %c0_5] : memref<8x1xf32, #tpu.memory_space<vmem>>, vector<8x1xf32>
    %17 = vector.broadcast %16 : vector<8x1xf32> to vector<8x256xf32>
    %18 = arith.mulf %15, %17 : vector<8x256xf32>
    %c0_6 = arith.constant 0 : index
    %c0_7 = arith.constant 0 : index
    %19 = vector.load %arg7[%c0_6, %c0_7] : memref<8x128xf32, #tpu.memory_space<vmem>>, vector<8x128xf32>
    %c0_8 = arith.constant 0 : index
    %c0_9 = arith.constant 0 : index
    %20 = vector.load %arg5[%c0_8, %c0_9] : memref<256x128xf32, #tpu.memory_space<vmem>>, vector<256x128xf32>
    %cst = arith.constant dense<0.000000e+00> : vector<8x128xf32>
    %21 = tpu.matmul %18, %20, %cst {dimension_numbers = #tpu.dot_dimension_numbers<[1], [0], [0], [1], [0, 0, 1, 1], [], []>} : vector<8x256xf32>, vector<256x128xf32>, vector<8x128xf32> -> vector<8x128xf32>
    %22 = arith.addf %19, %21 : vector<8x128xf32>
    %c0_10 = arith.constant 0 : index
    %c0_11 = arith.constant 0 : index
    %23 = vector.load %arg7[%c0_10, %c0_11] : memref<8x128xf32, #tpu.memory_space<vmem>>, vector<8x128xf32>
    tpu.vector_store %arg7[%c0_10, %c0_11], %22 {strides = array<i32>} : memref<8x128xf32, #tpu.memory_space<vmem>>, vector<8x128xf32>,
    %c0_i32_12 = arith.constant 0 : i32
    %24 = arith.cmpi eq, %arg1, %c0_i32_12 : i32
    %25 = arith.extui %24 : i1 to i32
    %c0_i32_13 = arith.constant 0 : i32
    %26 = arith.cmpi ne, %25, %c0_i32_13 : i32
    scf.if %26 {
      %c0_14 = arith.constant 0 : index
      %c0_15 = arith.constant 0 : index
      %27 = vector.load %arg7[%c0_14, %c0_15] : memref<8x128xf32, #tpu.memory_space<vmem>>, vector<8x128xf32>
      %cst_16 = arith.constant 0.000000e+00 : f32
      %28 = vector.broadcast %cst_16 : f32 to vector<8x128xf32>
      %29 = arith.maximumf %27, %28 : vector<8x128xf32>
      %c0_17 = arith.constant 0 : index
      %c0_18 = arith.constant 0 : index
      %30 = vector.load %arg6[%c0_17, %c0_18] : memref<8x128xf32, #tpu.memory_space<vmem>>, vector<8x128xf32>
      tpu.vector_store %arg6[%c0_17, %c0_18], %29 {strides = array<i32>} : memref<8x128xf32, #tpu.memory_space<vmem>>, vector<8x128xf32>,
    } else {
    }
    return
  }
  func.func @transform_0(%arg0: i32, %arg1: i32) -> (i32, i32) {
    %c0_i32 = arith.constant 0 : i32
    %c0_i32_0 = arith.constant 0 : i32
    return %arg0, %c0_i32 : i32, i32
  }
  func.func @transform_1(%arg0: i32, %arg1: i32) -> (i32, i32) {
    %c0_i32 = arith.constant 0 : i32
    %c0_i32_0 = arith.constant 0 : i32
    return %arg0, %c0_i32 : i32, i32
  }
  func.func @transform_2(%arg0: i32, %arg1: i32) -> (i32, i32) {
    %c0_i32 = arith.constant 0 : i32
    %c0_i32_0 = arith.constant 0 : i32
    return %arg0, %c0_i32 : i32, i32
  }
  func.func @transform_3(%arg0: i32, %arg1: i32) -> (i32, i32) {
    %c0_i32 = arith.constant 0 : i32
    %c0_i32_0 = arith.constant 0 : i32
    return %arg1, %c0_i32 : i32, i32
  }
  func.func @transform_4(%arg0: i32, %arg1: i32) -> (i32, i32) {
    %c0_i32 = arith.constant 0 : i32
    %c0_i32_0 = arith.constant 0 : i32
    return %arg0, %c0_i32 : i32, i32
  }
}

</mosaic_0001>

<bundles_post_ra>
// kernel: tpu_custom_call.1
= control target key start
LH: loop header
LB: loop body
LE: loop exit
PB: predicated region body
PF: predicated region fallthrough
CT: control target
= control target key end

     0   :  { %9 = vsyncpa [#allocation4], 0  ;;  %s278_s0 = inlined_call_operand.vmem [shape: s32[8,1], index: 0, kind: input, shape index: {}]   ;;  %s279_s1 = inlined_call_operand.vmem [shape: s32[8,1], index: 1, kind: input, shape index: {}]   ;;  %s280_s2 = inlined_call_operand.vmem [shape: f32[8,1], index: 2, kind: input, shape index: {}]   ;;  %s281_s3 = inlined_call_operand.hbm [shape: f32[256,128], index: 3, kind: input, shape index: {}]   ;;  %s282_s4 = inlined_call_operand.hbm [shape: f32[8,128], index: 4, kind: output, shape index: {}]  }
   0x1   :  { %10 = vsyncpa [#allocation5], 0  ;;  %s21_s17 = sshll.u32 %s281_s3, 4  ;;  %s232_s18 = smov [#allocation3]   ;;  %s22_s17 = int_to_ptr.hbm [resolvable:$true] %s21_s17 }
   0x2   :  { %s23_s19 = sshll.u32 %s232_s18, 4  ;;  %s233_s20 = smov 128   ;;  %s24_s19 = int_to_ptr.vmem [resolvable:$true] %s23_s19 }
   0x3   :  { %s234_s21 = smov 8  }
   0x4   :  { %29 = dma.hbm_to_vmem [thread:$0]  %s22_s17, 4096, %s24_s19, [#allocation4], %s233_s20, %s233_s20, %s234_s21  }
   0x5   :  { %228 = dma.done.wait [#allocation4], 4096  }
   0x6   :  { %229 = vsyncadd [#allocation4], 4294963200  ;;  %v235_v0 = vmov 0   ;;  %v46_v1 = vld [vmem:[%s278_s0] sm:$0xff]  ;;  %v88_v3 = vld [vmem:[#allocation3 + $0x78] sm:$0xff]  ;;  %v40_v36 = vlaneseq  ;;  %v236_v42 = vmov 0.0  }
   0x7   :  { %178 = vset.pattern.permute.xlu0 %v235_v0  ;;  %179 = vset.pattern.permute.xlu1 %v235_v0  ;;  %v64_v2 = vld [vmem:[%s280_s2] sm:$0xff]  ;;  %v104_v4 = vld [vmem:[#allocation3 + $0xf8] sm:$0xff]  ;;  %v87_v5 = vld [vmem:[#allocation3 + $0x70] sm:$0xff]  ;;  %s160_s28 = sshll.u32 %s282_s4, 4  ;;  %s161_s28 = int_to_ptr.hbm [resolvable:$true] %s160_s28 }
   0x8   :  { %48 = vperm.xlu0 %178, %v46_v1   ;;  %67 = vperm.xlu1 %179, %v64_v2   ;;  %v103_v6 = vld [vmem:[#allocation3 + $0xf0] sm:$0xff]  ;;  %v86_v7 = vld [vmem:[#allocation3 + $0x68] sm:$0xff]  ;;  %v85_v9 = vld [vmem:[#allocation3 + $0x60] sm:$0xff]  ;;  %v41_v38 = vand.u32 127, %v40_v36 }
   0x9   :  { %105 = vmatpush.msra.mxu0 %v88_v3  ;;  %125 = vmatpush.msra.mxu1 %v104_v4  ;;  %v102_v8 = vld [vmem:[#allocation3 + $0xe8] sm:$0xff]  ;;  %v101_v10 = vld [vmem:[#allocation3 + $0xe0] sm:$0xff]  ;;  %v84_v12 = vld [vmem:[#allocation3 + $0x58] sm:$0xff] }
   0xa   :  { %v52_v11 = vld [vmem:[%s279_s1] sm:$0xff]  ;;  %v100_v13 = vld [vmem:[#allocation3 + $0xd8] sm:$0xff]  ;;  %v83_v14 = vld [vmem:[#allocation3 + $0x50] sm:$0xff]  ;;  %v42_v39 = vadd.s32 128, %v41_v38  ;;  %s237_s1 = smov [#allocation6]  }
   0xb   :  { %106 = vmatpush.msra.mxu0 %v87_v5  ;;  %126 = vmatpush.msra.mxu1 %v103_v6  ;;  %v99_v15 = vld [vmem:[#allocation3 + $0xd0] sm:$0xff]  ;;  %v82_v16 = vld [vmem:[#allocation3 + $0x48] sm:$0xff]  ;;  %v81_v18 = vld [vmem:[#allocation3 + $0x40] sm:$0xff]  ;;  %s158_s2 = sshll.u32 %s237_s1, 4  ;;  %s159_s2 = int_to_ptr.vmem [resolvable:$true] %s158_s2 }
   0xc   :  { %v98_v17 = vld [vmem:[#allocation3 + $0xc8] sm:$0xff]  ;;  %v97_v19 = vld [vmem:[#allocation3 + $0xc0] sm:$0xff]  ;;  %v80_v20 = vld [vmem:[#allocation3 + $0x38] sm:$0xff] }
   0xd   :  { %107 = vmatpush.msra.mxu0 %v86_v7  ;;  %127 = vmatpush.msra.mxu1 %v102_v8  ;;  %v96_v21 = vld [vmem:[#allocation3 + $0xb8] sm:$0xff]  ;;  %v79_v22 = vld [vmem:[#allocation3 + $0x30] sm:$0xff]  ;;  %v78_v24 = vld [vmem:[#allocation3 + $0x28] sm:$0xff] }
   0xe   :  { %v95_v23 = vld [vmem:[#allocation3 + $0xb0] sm:$0xff]  ;;  %v94_v25 = vld [vmem:[#allocation3 + $0xa8] sm:$0xff]  ;;  %v77_v26 = vld [vmem:[#allocation3 + $0x20] sm:$0xff] }
   0xf   :  { %108 = vmatpush.msra.mxu0 %v85_v9  ;;  %128 = vmatpush.msra.mxu1 %v101_v10  ;;  %v93_v27 = vld [vmem:[#allocation3 + $0xa0] sm:$0xff]  ;;  %v76_v28 = vld [vmem:[#allocation3 + $0x18] sm:$0xff]  ;;  %v75_v30 = vld [vmem:[#allocation3 + $0x10] sm:$0xff] }
  0x10   :  { %54 = vperm.xlu0 %178, %v52_v11   ;;  %v92_v29 = vld [vmem:[#allocation3 + $0x98] sm:$0xff]  ;;  %v91_v31 = vld [vmem:[#allocation3 + $0x90] sm:$0xff]  ;;  %v74_v32 = vld [vmem:[#allocation3 + $0x8] sm:$0xff] }
  0x11   :  { %109 = vmatpush.msra.mxu0 %v84_v12  ;;  %129 = vmatpush.msra.mxu1 %v100_v13  ;;  %v90_v33 = vld [vmem:[#allocation3 + $0x88] sm:$0xff]  ;;  %v73_v34 = vld [vmem:[#allocation3] sm:$0xff] }
  0x12   :  { %v89_v35 = vld [vmem:[#allocation3 + $0x80] sm:$0xff] }
  0x13   :  { %110 = vmatpush.msra.mxu0 %v83_v14  ;;  %130 = vmatpush.msra.mxu1 %v99_v15 }
  0x15   :  { %111 = vmatpush.msra.mxu0 %v82_v16  ;;  %131 = vmatpush.msra.mxu1 %v98_v17 }
  0x17   :  { %112 = vmatpush.msra.mxu0 %v81_v18  ;;  %132 = vmatpush.msra.mxu1 %v97_v19 }
  0x19   :  { %113 = vmatpush.msra.mxu0 %v80_v20  ;;  %133 = vmatpush.msra.mxu1 %v96_v21 }
  0x1b   :  { %114 = vmatpush.msra.mxu0 %v79_v22  ;;  %134 = vmatpush.msra.mxu1 %v95_v23 }
  0x1d   :  { %115 = vmatpush.msra.mxu0 %v78_v24  ;;  %135 = vmatpush.msra.mxu1 %v94_v25 }
  0x1f   :  { %116 = vmatpush.msra.mxu0 %v77_v26  ;;  %136 = vmatpush.msra.mxu1 %v93_v27 }
  0x21   :  { %117 = vmatpush.msra.mxu0 %v76_v28  ;;  %137 = vmatpush.msra.mxu1 %v92_v29 }
  0x23   :  { %118 = vmatpush.msra.mxu0 %v75_v30  ;;  %138 = vmatpush.msra.mxu1 %v91_v31 }
  0x25   :  { %119 = vmatpush.msra.mxu0 %v74_v32  ;;  %139 = vmatpush.msra.mxu1 %v90_v33 }
  0x27   :  { %120 = vmatpush.msra.mxu0 %v73_v34  ;;  %140 = vmatpush.msra.mxu1 %v89_v35 }
  0x7a   :  { %v49_v37 = vpop.permute.xlu0 %48  ;;  %v68_v41 = vpop.permute.xlu1 %67 }
  0x7b   :  { %vm50_vm0 = vcmp.ge.s32.totalorder %v41_v38, %v49_v37  ;;  %vm51_vm3 = vcmp.ge.s32.totalorder %v42_v39, %v49_v37 }
  0x82   :  { %v55_v40 = vpop.permute.xlu0 %54 }
  0x83   :  { %vm56_vm1 = vcmp.lt.s32.totalorder %v41_v38, %v55_v40  ;;  %vm57_vm2 = vcmp.lt.s32.totalorder %v42_v39, %v55_v40 }
  0x84   :  { %vm58_vm4 = vmand %vm50_vm0, %vm56_vm1 }
  0x85   :  { %vm59_vm5 = vmand %vm51_vm3, %vm57_vm2  ;;  %v170_v43 = vsel %vm58_vm4, 1.0, %v236_v42 }
  0x86   :  { %v171_v44 = vsel %vm59_vm5, 1.0, %v236_v42  ;;  %v70_v45 = vmul.f32 %v170_v43, %v68_v41 }
  0x87   :  { %v71_v46 = vmul.f32 %v171_v44, %v68_v41 }
  0x88   :  { %121 = vmatmul.f32.vlgmr.msra.gmra.mxu0 %v70_v45 }
  0x89   :  { %141 = vmatmul.f32.vlgmr.msra.gmra.mxu1 %v71_v46 }
 0x105   :  { %v122_v47 = vpop.f32.mrf.mxu0 }
 0x106   :  { %v142_v48 = vpop.f32.mrf.mxu1 }
 0x107   :  { %v143_v49 = vadd.f32 %v142_v48, %v122_v47 }
 0x109   :  { %v151_v50 = vmax.f32 %v143_v49, 0.0 }
 0x10b   :  { %152 = vst [vmem:[#allocation6] sm:$0xff] %v151_v50 }
 0x10c   :  { %163 = dma.vmem_to_hbm [thread:$0]  %s159_s2, 128, %s161_s28, [#allocation5]  }
 0x10d   :  { %230 = dma.done.wait [#allocation5], 128  }
 0x10e   :  { %231 = vsyncadd [#allocation5], 4294967168 }
 0x10f   :  { %168 = vsyncpa [#allocation4], 1 }
 0x110   :  { %169 = vsyncpa [#allocation5], 1 }

</bundles_post_ra>
